<compile_context>
chip_gen: v6e
topology: v6e:2x2x1
jax: 0.10.0
libtpu: 0.0.40
codegen_flags: <defaults>
</compile_context>

<pallas_src>
import functools

import jax
import jax.numpy as jnp
from jax.experimental import pallas as pl
from jax.experimental.pallas import tpu as pltpu


def _round_up(a: int, b: int) -> int:
    return ((a + b - 1) // b) * b


def _vmem_budget_bytes() -> int:
    """~80% of this generation's physical VMEM (headroom for compiler scratch)."""
    cap = 64 * 2**20  # conservative default == v7x per-TC VMEM
    try:
        info = pltpu.get_tpu_info()
        cap = int(getattr(info, "vmem_capacity_bytes", cap))
    except Exception:
        pass
    return int(cap * 0.8)


def resblock_kernel(x_ref, w_ref, b_ref, o_ref):
    """One (tm, tn) output tile of y = x + relu(x @ W + b).

    x_ref: (tm, D) full-K row tile (resident across the j axis)
    w_ref: (D, tn) weight column block (resident for the whole grid when tn==D)
    b_ref: (1, tn);  o_ref: (tm, tn)
    """
    tn = o_ref.shape[-1]
    j = pl.program_id(1)

    x = x_ref[...]
    # MXU operands in the weight's dtype (bf16 if caller downcast W); f32 acc.
    y = jnp.dot(x.astype(w_ref.dtype), w_ref[...],
                preferred_element_type=jnp.float32)
    y = y + b_ref[...].astype(jnp.float32)        # (1, tn) broadcast over rows
    y = jnp.maximum(y, 0.0)                       # act = ReLU

    # Residual in the original precision of x, on the matching column block.
    col = pl.multiple_of(j * tn, tn)
    x_res = x_ref[:, pl.ds(col, tn)]
    o_ref[...] = (x_res.astype(jnp.float32) + y).astype(o_ref.dtype)


def prepare_params(weight, bias, dtype):
    """PyTorch nn.Linear layout (out, in) -> (in, out); cast once off hot path."""
    return weight.T.astype(dtype), bias.reshape(1, -1).astype(dtype)


def _pick_tiles(M: int, D: int, x_sz: int, w_sz: int, out_sz: int, budget: int):
    """Choose (tm, tn).  Prefer a VMEM-resident weight (tn == D)."""

    def fits(tm, tn):
        return (2 * D * tn * w_sz          # weight block (conservative 2-buf)
                + 2 * tm * D * x_sz        # full-K x row tile (double buffered)
                + 2 * tm * tn * out_sz     # output tile (double buffered)
                + 2 * tn * w_sz            # bias
                ) <= budget

    m_cap = max(_round_up(max(M, 1), 128), 128)

    # 1) Resident weight: HBM weight traffic collapses to exactly D*D bytes.
    for tm in (1024, 512, 256, 128):
        tm = min(tm, m_cap)
        if fits(tm, D):
            return tm, D

    # 2) Stream the weight over N blocks.  256-first: v6e/v7x MXUs are 256x256,
    #    so 128-wide N tiles waste half the MXU columns; keep 128 as last resort.
    for tm in (512, 256, 128):
        tm = min(tm, m_cap)
        for tn in (512, 256, 128):
            if D % tn == 0 and fits(tm, tn):
                return tm, tn

    # 3) Minimal fallback.
    return 128, (128 if D % 128 == 0 else D)


@functools.partial(jax.jit, static_argnames=("tm", "tn", "vmem_limit"))
def _resblock_call(x_2d, w_t, b_2d, *, tm, tn, vmem_limit):
    M, D = x_2d.shape
    gi = pl.cdiv(M, tm)
    gj = D // tn

    x_sz = jnp.dtype(x_2d.dtype).itemsize
    w_sz = jnp.dtype(w_t.dtype).itemsize
    # Weight is fetched once when resident (gj == 1), once per row-tile otherwise.
    w_fetches = 1 if gj == 1 else gi
    cost = pl.CostEstimate(
        flops=2 * M * D * D,
        transcendentals=0,
        bytes_accessed=(M * D * x_sz                 # x read
                        + w_fetches * D * D * w_sz   # weight (re)fetches
                        + D * w_sz                   # bias
                        + M * D * x_sz),             # output write
    )

    return pl.pallas_call(
        resblock_kernel,
        out_shape=jax.ShapeDtypeStruct((M, D), x_2d.dtype),
        grid_spec=pltpu.PrefetchScalarGridSpec(
            num_scalar_prefetch=0,
            grid=(gi, gj),                           # ragged M handled by Pallas
            in_specs=[
                pl.BlockSpec((tm, D), lambda i, j: (i, 0)),   # x row tile, full K
                pl.BlockSpec((D, tn), lambda i, j: (0, j)),   # weight; constant
                                                              # index when tn==D
                                                              # -> VMEM-resident
                pl.BlockSpec((1, tn), lambda i, j: (0, j)),   # bias block
            ],
            out_specs=pl.BlockSpec((tm, tn), lambda i, j: (i, j)),
        ),
        compiler_params=pltpu.CompilerParams(
            dimension_semantics=("parallel", "parallel"),
            vmem_limit_bytes=vmem_limit,
        ),
        cost_estimate=cost,
    )(x_2d, w_t, b_2d)


def resblock_apply(x, weight, bias, *, mxu_dtype=None):
    """x: (..., D); weight: (D_out, D_in) PyTorch layout; bias: (D_out,).

    mxu_dtype=jnp.bfloat16 runs the matmul on the bf16 MXU path (f32 accumulate,
    residual stays in x's precision).  Default: weight cast to x.dtype.
    """
    D = x.shape[-1]
    assert weight.shape == (D, D), "ResBlock residual requires dim_in == dim_out"

    # Small / non-lane-aligned D: Pallas would emit masked vst.msk partial
    # stores and run the MXU at K=N<128 -- plain XLA is strictly faster there.
    if D < 128 or D % 128 != 0:
        w = weight.astype(x.dtype)
        b = bias.astype(x.dtype)
        return x + jax.nn.relu(jnp.dot(x, w.T) + b)

    w_t, b_2d = prepare_params(weight, bias, mxu_dtype or x.dtype)

    x_2d = x.reshape(-1, D)
    M = x_2d.shape[0]
    budget = _vmem_budget_bytes()
    tm, tn = _pick_tiles(
        M, D,
        x_sz=jnp.dtype(x_2d.dtype).itemsize,
        w_sz=jnp.dtype(w_t.dtype).itemsize,
        out_sz=jnp.dtype(x.dtype).itemsize,
        budget=budget,
    )
    out = _resblock_call(x_2d, w_t, b_2d, tm=tm, tn=tn, vmem_limit=budget)
    return out.reshape(x.shape)


if __name__ == "__main__":
    key = jax.random.PRNGKey(0)
    k_x, k_w, k_b = jax.random.split(key, 3)

    # Small, lane-dense shapes: batch=2, seq=8, dim_in == dim_out == 128.
    batch, seq, dim = 2, 8, 128
    x = jax.random.normal(k_x, (batch, seq, dim), dtype=jnp.float32)

    # Deterministic parameter init (PyTorch Linear layout: weight (out, in)).
    bound = 1.0 / (dim ** 0.5)
    weight = jax.random.uniform(k_w, (dim, dim), jnp.float32, -bound, bound)
    bias = jax.random.uniform(k_b, (dim,), jnp.float32, -bound, bound)

    out = resblock_apply(x, weight, bias)
    out = jax.block_until_ready(out)

    # Pure-JAX reference check (M=16 also exercises the ragged-row-tile path).
    ref = x + jax.nn.relu(jnp.einsum("bsd,od->bso", x, weight) + bias)
    assert out.shape == x.shape
    assert jnp.allclose(out, ref, atol=1e-5, rtol=1e-5)

    print("KERNEL_OK")
</pallas_src>

<mosaic_0001>
module attributes {stable_mosaic.version = 11 : i64} {
  func.func @resblock_kernel(%arg0: i32, %arg1: i32, %arg2: memref<128x128xf32, #tpu.memory_space<vmem>>, %arg3: memref<128x128xf32, #tpu.memory_space<vmem>>, %arg4: memref<1x128xf32, #tpu.memory_space<vmem>>, %arg5: memref<128x128xf32, #tpu.memory_space<vmem>>) attributes {dimension_semantics = [#tpu.dimension_semantics<parallel>, #tpu.dimension_semantics<parallel>], iteration_bounds = array<i64: 1, 1>, scalar_prefetch = 0 : i64, scratch_operands = 0 : i64, tpu.core_type = #tpu.core_type<tc>, window_params = [{transform_indices = @transform_0, window_bounds = array<i64: 128, 128>}, {transform_indices = @transform_1, window_bounds = array<i64: 128, 128>}, {transform_indices = @transform_2, window_bounds = array<i64: 1, 128>}, {transform_indices = @transform_3, window_bounds = array<i64: 128, 128>}]} {
    %c0 = arith.constant 0 : index
    %c0_0 = arith.constant 0 : index
    %0 = vector.load %arg2[%c0, %c0_0] : memref<128x128xf32, #tpu.memory_space<vmem>>, vector<128x128xf32>
    %c0_1 = arith.constant 0 : index
    %c0_2 = arith.constant 0 : index
    %1 = vector.load %arg3[%c0_1, %c0_2] : memref<128x128xf32, #tpu.memory_space<vmem>>, vector<128x128xf32>
    %cst = arith.constant dense<0.000000e+00> : vector<128x128xf32>
    %2 = tpu.matmul %0, %1, %cst {dimension_numbers = #tpu.dot_dimension_numbers<[1], [0], [0], [1], [0, 0, 1, 1], [], []>} : vector<128x128xf32>, vector<128x128xf32>, vector<128x128xf32> -> vector<128x128xf32>
    %c0_3 = arith.constant 0 : index
    %c0_4 = arith.constant 0 : index
    %3 = vector.load %arg4[%c0_3, %c0_4] : memref<1x128xf32, #tpu.memory_space<vmem>>, vector<1x128xf32>
    %4 = vector.broadcast %3 : vector<1x128xf32> to vector<128x128xf32>
    %5 = arith.addf %2, %4 : vector<128x128xf32>
    %cst_5 = arith.constant 0.000000e+00 : f32
    %6 = vector.broadcast %cst_5 : f32 to vector<128x128xf32>
    %7 = arith.maximumf %5, %6 : vector<128x128xf32>
    %c128_i32 = arith.constant 128 : i32
    %8 = arith.muli %arg1, %c128_i32 : i32
    %9 = tpu.assume_multiple %8, 128 : i32
    %c0_6 = arith.constant 0 : index
    %10 = arith.index_cast %9 : i32 to index
    %11 = vector.load %arg2[%c0_6, %10] : memref<128x128xf32, #tpu.memory_space<vmem>>, vector<128x128xf32>
    %12 = arith.addf %11, %7 : vector<128x128xf32>
    %c0_7 = arith.constant 0 : index
    %c0_8 = arith.constant 0 : index
    %13 = vector.load %arg5[%c0_7, %c0_8] : memref<128x128xf32, #tpu.memory_space<vmem>>, vector<128x128xf32>
    tpu.vector_store %arg5[%c0_7, %c0_8], %12 {strides = array<i32>} : memref<128x128xf32, #tpu.memory_space<vmem>>, vector<128x128xf32>,
    return
  }
  func.func @transform_0(%arg0: i32, %arg1: i32) -> (i32, i32) {
    %c0_i32 = arith.constant 0 : i32
    %c0_i32_0 = arith.constant 0 : i32
    return %arg0, %c0_i32 : i32, i32
  }
  func.func @transform_1(%arg0: i32, %arg1: i32) -> (i32, i32) {
    %c0_i32 = arith.constant 0 : i32
    %c0_i32_0 = arith.constant 0 : i32
    return %c0_i32, %arg1 : i32, i32
  }
  func.func @transform_2(%arg0: i32, %arg1: i32) -> (i32, i32) {
    %c0_i32 = arith.constant 0 : i32
    %c0_i32_0 = arith.constant 0 : i32
    return %c0_i32, %arg1 : i32, i32
  }
  func.func @transform_3(%arg0: i32, %arg1: i32) -> (i32, i32) {
    %c0_i32 = arith.constant 0 : i32
    return %arg0, %arg1 : i32, i32
  }
}

</mosaic_0001>

<bundles_post_ra>
// kernel: _resblock_call.1
= control target key start
LH: loop header
LB: loop body
LE: loop exit
PB: predicated region body
PF: predicated region fallthrough
CT: control target
= control target key end

     0   :  { %8 = vsyncpa [#allocation3], 0  ;;  %s610_s0 = inlined_call_operand.hbm [shape: f32[16,128], index: 0, kind: input, shape index: {}]   ;;  %s611_s1 = inlined_call_operand.hbm [shape: f32[128,128], index: 1, kind: input, shape index: {}]   ;;  %s612_s2 = inlined_call_operand.vmem [shape: f32[1,128], index: 2, kind: input, shape index: {}]   ;;  %s613_s3 = inlined_call_operand.hbm [shape: f32[16,128], index: 3, kind: output, shape index: {}]  }
   0x1   :  { %9 = vsyncpa [#allocation6], 0 }
   0x2   :  { %10 = vsyncpa [#allocation4], 0 }
   0x3   :  { %15 = vsyncadd [#allocation3], 1792  ;;  %s506_s12 = smov [#allocation2]  }
   0x4   :  { %s16_s13 = sshll.u32 %s506_s12, 4  ;;  %s17_s13 = int_to_ptr.vmem [resolvable:$true] %s16_s13 }
   0x5   :  { %s448_s14 = scalar_lea.vmem %s17_s13, 256  ;;  %s452_s15 = scalar_lea.vmem %s17_s13, 2048 }
   0x6   :  { %p449_p0 = scmp.ne.s32.totalorder %s17_s13, %s448_s14  ;;  %p453_p1 = scmp.lt.s32.totalorder %s17_s13, %s17_s13 }
   0x7   :  { %p454_p2 = scmp.lt.s32.totalorder %s452_s15, %s448_s14 }
   0x9   :  { %p455_p3 = por %p454_p2, %p453_p1 }
   0xb   :  { %p456_p4 = pnand %p455_p3, %p449_p0 }
   0xd   :  { %459 = shalt.err (!%p456_p4)
}
   0xe   :  { %s507_s16 = smov 128   ;;  %s508_s17 = smov 8  }
   0xf   :  { %22 = dma.hbm_to_vmem [thread:$0]  %s610_s0, 256, %s17_s13, [#allocation3], %s507_s16, %s507_s16, %s508_s17  }
  0x10   :  { %s509_s20 = smov [#allocation5]  }
  0x11   :  { %s28_s21 = sshll.u32 %s509_s20, 4  ;;  %s29_s21 = int_to_ptr.vmem [resolvable:$true] %s28_s21 }
  0x12   :  { %s468_s22 = scalar_lea.vmem %s29_s21, 2048  ;;  %p473_p6 = scmp.lt.s32.totalorder %s29_s21, %s29_s21 }
  0x13   :  { %p469_p5 = scmp.ne.s32.totalorder %s29_s21, %s468_s22  ;;  %p474_p7 = scmp.lt.s32.totalorder %s468_s22, %s468_s22 }
  0x15   :  { %p475_p8 = por %p474_p7, %p473_p6 }
  0x17   :  { %p476_p9 = pnand %p475_p8, %p469_p5 }
  0x19   :  { %479 = shalt.err (!%p476_p9)
}
  0x1a   :  { %34 = dma.hbm_to_vmem [thread:$0]  %s611_s1, 2048, %s29_s21, [#allocation6], %s507_s16, %s507_s16, %s508_s17  }
  0x1b   :  { %500 = dma.done.wait [#allocation3], 2048  }
  0x1c   :  { %501 = vsyncadd [#allocation3], 4294965248 }
  0x1d   :  { %502 = dma.done.wait [#allocation6], 2048  }
  0x1e   :  { %503 = vsyncadd [#allocation6], 4294965248  ;;  %v74_v0 = vld [vmem:[#allocation5 + $0x78] sm:$0xff]  ;;  %v73_v1 = vld [vmem:[#allocation5 + $0x70] sm:$0xff] }
  0x1f   :  { %347 = vmatprep.subr.mxu0 %v74_v0  ;;  %403 = vmatprep.subr.mxu1 %v74_v0  ;;  %v72_v2 = vld [vmem:[#allocation5 + $0x68] sm:$0xff]  ;;  %v71_v3 = vld [vmem:[#allocation5 + $0x60] sm:$0xff]  ;;  %v70_v4 = vld [vmem:[#allocation5 + $0x58] sm:$0xff] }
  0x20   :  { %348 = vmatpush3.msra.mxu0 %v74_v0  ;;  %419 = vmatpush3.msra.mxu1 %v74_v0  ;;  %v69_v5 = vld [vmem:[#allocation5 + $0x50] sm:$0xff]  ;;  %v68_v6 = vld [vmem:[#allocation5 + $0x48] sm:$0xff]  ;;  %v67_v7 = vld [vmem:[#allocation5 + $0x40] sm:$0xff] }
  0x21   :  { %349 = vmatprep.subr.mxu0 %v73_v1  ;;  %404 = vmatprep.subr.mxu1 %v73_v1  ;;  %v66_v8 = vld [vmem:[#allocation5 + $0x38] sm:$0xff]  ;;  %v65_v9 = vld [vmem:[#allocation5 + $0x30] sm:$0xff]  ;;  %v64_v10 = vld [vmem:[#allocation5 + $0x28] sm:$0xff] }
  0x22   :  { %350 = vmatpush3.msra.mxu0 %v73_v1  ;;  %420 = vmatpush3.msra.mxu1 %v73_v1  ;;  %v63_v11 = vld [vmem:[#allocation5 + $0x20] sm:$0xff]  ;;  %v62_v12 = vld [vmem:[#allocation5 + $0x18] sm:$0xff]  ;;  %v61_v13 = vld [vmem:[#allocation5 + $0x10] sm:$0xff] }
  0x23   :  { %351 = vmatprep.subr.mxu0 %v72_v2  ;;  %405 = vmatprep.subr.mxu1 %v72_v2  ;;  %v60_v14 = vld [vmem:[#allocation5 + $0x8] sm:$0xff]  ;;  %v59_v15 = vld [vmem:[#allocation5] sm:$0xff]  ;;  %v543_v20 = vld [vmem:[#allocation2 + $0x10] sm:$0xff] }
  0x24   :  { %352 = vmatpush3.msra.mxu0 %v72_v2  ;;  %421 = vmatpush3.msra.mxu1 %v72_v2  ;;  %v43_v16 = vld [vmem:[#allocation2] sm:$0xff]  ;;  %v44_v18 = vld [vmem:[#allocation2 + $0x8] sm:$0xff]  ;;  %v545_v21 = vld [vmem:[#allocation2 + $0x50] sm:$0xff] }
  0x25   :  { %353 = vmatprep.subr.mxu0 %v71_v3  ;;  %406 = vmatprep.subr.mxu1 %v71_v3  ;;  %v51_v17 = vld [vmem:[#allocation2 + $0x40] sm:$0xff]  ;;  %v52_v19 = vld [vmem:[#allocation2 + $0x48] sm:$0xff]  ;;  %v46_v22 = vld [vmem:[#allocation2 + $0x18] sm:$0xff] }
  0x26   :  { %354 = vmatpush3.msra.mxu0 %v71_v3  ;;  %422 = vmatpush3.msra.mxu1 %v71_v3  ;;  %v54_v23 = vld [vmem:[#allocation2 + $0x58] sm:$0xff]  ;;  %v549_v24 = vld [vmem:[#allocation2 + $0x20] sm:$0xff]  ;;  %v555_v26 = vld [vmem:[#allocation2 + $0x28] sm:$0xff] }
  0x27   :  { %355 = vmatprep.subr.mxu0 %v70_v4  ;;  %407 = vmatprep.subr.mxu1 %v70_v4  ;;  %v551_v25 = vld [vmem:[#allocation2 + $0x60] sm:$0xff]  ;;  %v557_v27 = vld [vmem:[#allocation2 + $0x68] sm:$0xff]  ;;  %v559_v28 = vld [vmem:[#allocation2 + $0x30] sm:$0xff] }
  0x28   :  { %356 = vmatpush3.msra.mxu0 %v70_v4  ;;  %423 = vmatpush3.msra.mxu1 %v70_v4  ;;  %v561_v29 = vld [vmem:[#allocation2 + $0x70] sm:$0xff]  ;;  %v567_v30 = vld [vmem:[#allocation2 + $0x38] sm:$0xff]  ;;  %v576_v32 = vld [vmem:[%s612_s2] ss:$0 sm:$0xff] }
  0x29   :  { %357 = vmatprep.subr.mxu0 %v69_v5  ;;  %408 = vmatprep.subr.mxu1 %v69_v5  ;;  %v569_v31 = vld [vmem:[#allocation2 + $0x78] sm:$0xff] }
  0x2a   :  { %358 = vmatpush3.msra.mxu0 %v69_v5  ;;  %424 = vmatpush3.msra.mxu1 %v69_v5 }
  0x2b   :  { %359 = vmatprep.subr.mxu0 %v68_v6  ;;  %409 = vmatprep.subr.mxu1 %v68_v6 }
  0x2c   :  { %360 = vmatpush3.msra.mxu0 %v68_v6  ;;  %425 = vmatpush3.msra.mxu1 %v68_v6 }
  0x2d   :  { %361 = vmatprep.subr.mxu0 %v67_v7  ;;  %410 = vmatprep.subr.mxu1 %v67_v7 }
  0x2e   :  { %362 = vmatpush3.msra.mxu0 %v67_v7  ;;  %426 = vmatpush3.msra.mxu1 %v67_v7 }
  0x2f   :  { %363 = vmatprep.subr.mxu0 %v66_v8  ;;  %411 = vmatprep.subr.mxu1 %v66_v8 }
  0x30   :  { %364 = vmatpush3.msra.mxu0 %v66_v8  ;;  %427 = vmatpush3.msra.mxu1 %v66_v8 }
  0x31   :  { %365 = vmatprep.subr.mxu0 %v65_v9  ;;  %412 = vmatprep.subr.mxu1 %v65_v9 }
  0x32   :  { %366 = vmatpush3.msra.mxu0 %v65_v9  ;;  %428 = vmatpush3.msra.mxu1 %v65_v9 }
  0x33   :  { %367 = vmatprep.subr.mxu0 %v64_v10  ;;  %413 = vmatprep.subr.mxu1 %v64_v10 }
  0x34   :  { %368 = vmatpush3.msra.mxu0 %v64_v10  ;;  %429 = vmatpush3.msra.mxu1 %v64_v10 }
  0x35   :  { %369 = vmatprep.subr.mxu0 %v63_v11  ;;  %414 = vmatprep.subr.mxu1 %v63_v11 }
  0x36   :  { %370 = vmatpush3.msra.mxu0 %v63_v11  ;;  %430 = vmatpush3.msra.mxu1 %v63_v11 }
  0x37   :  { %371 = vmatprep.subr.mxu0 %v62_v12  ;;  %415 = vmatprep.subr.mxu1 %v62_v12 }
  0x38   :  { %372 = vmatpush3.msra.mxu0 %v62_v12  ;;  %431 = vmatpush3.msra.mxu1 %v62_v12 }
  0x39   :  { %373 = vmatprep.subr.mxu0 %v61_v13  ;;  %416 = vmatprep.subr.mxu1 %v61_v13 }
  0x3a   :  { %374 = vmatpush3.msra.mxu0 %v61_v13  ;;  %432 = vmatpush3.msra.mxu1 %v61_v13 }
  0x3b   :  { %375 = vmatprep.subr.mxu0 %v60_v14  ;;  %417 = vmatprep.subr.mxu1 %v60_v14 }
  0x3c   :  { %376 = vmatpush3.msra.mxu0 %v60_v14  ;;  %433 = vmatpush3.msra.mxu1 %v60_v14 }
  0x3d   :  { %377 = vmatprep.subr.mxu0 %v59_v15  ;;  %418 = vmatprep.subr.mxu1 %v59_v15 }
  0x3e   :  { %378 = vmatpush3.msra.mxu0 %v59_v15  ;;  %434 = vmatpush3.msra.mxu1 %v59_v15 }
  0x3f   :  { %379 = vmatprep.mubr.f32.mxu0 %v43_v16  ;;  %391 = vmatprep.mubr.f32.mxu1 %v51_v17 }
  0x40   :  { %380 = vmatmul.mubr.f32.vlgmr.msra.gmra.mxu0 %v44_v18  ;;  %392 = vmatmul.mubr.f32.vlgmr.msra.gmra.mxu1 %v52_v19 }
  0x41   :  { %382 = vmatprep.mubr.f32.mxu0 %v543_v20  ;;  %394 = vmatprep.mubr.f32.mxu1 %v545_v21 }
  0x44   :  { %383 = vmatmul.mubr.f32.gmra.mxu0 %v46_v22  ;;  %395 = vmatmul.mubr.f32.gmra.mxu1 %v54_v23 }
  0x45   :  { %385 = vmatprep.mubr.f32.mxu0 %v549_v24  ;;  %397 = vmatprep.mubr.f32.mxu1 %v551_v25 }
  0x48   :  { %386 = vmatmul.mubr.f32.gmra.mxu0 %v555_v26  ;;  %398 = vmatmul.mubr.f32.gmra.mxu1 %v557_v27 }
  0x49   :  { %388 = vmatprep.mubr.f32.mxu0 %v559_v28  ;;  %400 = vmatprep.mubr.f32.mxu1 %v561_v29 }
  0x4c   :  { %389 = vmatmul.mubr.f32.gmra.mxu0 %v567_v30  ;;  %401 = vmatmul.mubr.f32.gmra.mxu1 %v569_v31 }
 0x100   :  { %v381_v33 = vpop.f32.mrf.mxu0  ;;  %v393_v34 = vpop.f32.mrf.mxu1 }
 0x101   :  { %v154_v35 = vadd.f32 %v381_v33, %v576_v32  ;;  %v194_v36 = vadd.f32 %v393_v34, %v576_v32 }
 0x102   :  { %v148_v37 = vpop.f32.mrf.mxu0  ;;  %v188_v38 = vpop.f32.mrf.mxu1 }
 0x103   :  { %v228_v39 = vmax.f32 %v154_v35, 0.0  ;;  %v236_v40 = vmax.f32 %v194_v36, 0.0  ;;  %v149_v41 = vadd.f32 %v576_v32, %v148_v37  ;;  %v189_v42 = vadd.f32 %v576_v32, %v188_v38 }
 0x104   :  { %v384_v43 = vpop.f32.mrf.mxu0  ;;  %v396_v44 = vpop.f32.mrf.mxu1 }
 0x105   :  { %v264_v45 = vadd.f32 %v228_v39, %v44_v18  ;;  %v272_v46 = vadd.f32 %v236_v40, %v52_v19  ;;  %v227_v47 = vmax.f32 %v149_v41, 0.0  ;;  %v235_v48 = vmax.f32 %v189_v42, 0.0 }
 0x106   :  { %v164_v49 = vadd.f32 %v384_v43, %v576_v32  ;;  %v204_v50 = vadd.f32 %v396_v44, %v576_v32  ;;  %v158_v51 = vpop.f32.mrf.mxu0  ;;  %v198_v52 = vpop.f32.mrf.mxu1 }
 0x107   :  { %280 = vst [vmem:[#allocation7 + $0x8] sm:$0xff] %v264_v45  ;;  %288 = vst [vmem:[#allocation7 + $0x48] sm:$0xff] %v272_v46  ;;  %v263_v53 = vadd.f32 %v227_v47, %v43_v16  ;;  %v271_v54 = vadd.f32 %v235_v48, %v51_v17  ;;  %v159_v55 = vadd.f32 %v576_v32, %v158_v51 }
 0x108   :  { %v199_v56 = vadd.f32 %v576_v32, %v198_v52  ;;  %v230_v57 = vmax.f32 %v164_v49, 0.0  ;;  %v238_v58 = vmax.f32 %v204_v50, 0.0  ;;  %v387_v59 = vpop.f32.mrf.mxu0  ;;  %v399_v60 = vpop.f32.mrf.mxu1 }
 0x109   :  { %279 = vst [vmem:[#allocation7] sm:$0xff] %v263_v53  ;;  %287 = vst [vmem:[#allocation7 + $0x40] sm:$0xff] %v271_v54  ;;  %v229_v61 = vmax.f32 %v159_v55, 0.0  ;;  %v174_v63 = vadd.f32 %v387_v59, %v576_v32  ;;  %v214_v0 = vadd.f32 %v399_v60, %v576_v32 }
 0x10a   :  { %v237_v62 = vmax.f32 %v199_v56, 0.0  ;;  %v266_v1 = vadd.f32 %v230_v57, %v46_v22  ;;  %v274_v2 = vadd.f32 %v238_v58, %v54_v23  ;;  %v168_v3 = vpop.f32.mrf.mxu0  ;;  %v208_v4 = vpop.f32.mrf.mxu1 }
 0x10b   :  { %v265_v5 = vadd.f32 %v229_v61, %v543_v20  ;;  %v232_v7 = vmax.f32 %v174_v63, 0.0  ;;  %v240_v8 = vmax.f32 %v214_v0, 0.0  ;;  %v169_v9 = vadd.f32 %v576_v32, %v168_v3 }
 0x10c   :  { %v273_v6 = vadd.f32 %v237_v62, %v545_v21  ;;  %282 = vst [vmem:[#allocation7 + $0x18] sm:$0xff] %v266_v1  ;;  %290 = vst [vmem:[#allocation7 + $0x58] sm:$0xff] %v274_v2  ;;  %v209_v10 = vadd.f32 %v576_v32, %v208_v4  ;;  %v390_v11 = vpop.f32.mrf.mxu0  ;;  %v402_v12 = vpop.f32.mrf.mxu1 }
 0x10d   :  { %281 = vst [vmem:[#allocation7 + $0x10] sm:$0xff] %v265_v5  ;;  %v268_v13 = vadd.f32 %v232_v7, %v555_v26  ;;  %v276_v14 = vadd.f32 %v240_v8, %v557_v27  ;;  %v184_v15 = vadd.f32 %v390_v11, %v576_v32  ;;  %v224_v16 = vadd.f32 %v402_v12, %v576_v32 }
 0x10e   :  { %289 = vst [vmem:[#allocation7 + $0x50] sm:$0xff] %v273_v6  ;;  %v231_v17 = vmax.f32 %v169_v9, 0.0  ;;  %v239_v18 = vmax.f32 %v209_v10, 0.0  ;;  %v178_v19 = vpop.f32.mrf.mxu0  ;;  %v218_v20 = vpop.f32.mrf.mxu1 }
 0x10f   :  { %284 = vst [vmem:[#allocation7 + $0x28] sm:$0xff] %v268_v13  ;;  %292 = vst [vmem:[#allocation7 + $0x68] sm:$0xff] %v276_v14  ;;  %v234_v21 = vmax.f32 %v184_v15, 0.0  ;;  %v242_v22 = vmax.f32 %v224_v16, 0.0  ;;  %v179_v23 = vadd.f32 %v576_v32, %v178_v19  ;;  %v219_v33 = vadd.f32 %v576_v32, %v218_v20 }
 0x110   :  { %v267_v26 = vadd.f32 %v231_v17, %v549_v24  ;;  %v275_v27 = vadd.f32 %v239_v18, %v551_v25 }
 0x111   :  { %v270_v34 = vadd.f32 %v234_v21, %v567_v30  ;;  %v278_v35 = vadd.f32 %v242_v22, %v569_v31  ;;  %v233_v36 = vmax.f32 %v179_v23, 0.0  ;;  %v241_v37 = vmax.f32 %v219_v33, 0.0 }
 0x112   :  { %283 = vst [vmem:[#allocation7 + $0x20] sm:$0xff] %v267_v26  ;;  %291 = vst [vmem:[#allocation7 + $0x60] sm:$0xff] %v275_v27 }
 0x113   :  { %286 = vst [vmem:[#allocation7 + $0x38] sm:$0xff] %v270_v34  ;;  %294 = vst [vmem:[#allocation7 + $0x78] sm:$0xff] %v278_v35  ;;  %v269_v38 = vadd.f32 %v233_v36, %v559_v28  ;;  %v277_v39 = vadd.f32 %v241_v37, %v561_v29 }
 0x115   :  { %285 = vst [vmem:[#allocation7 + $0x30] sm:$0xff] %v269_v38  ;;  %293 = vst [vmem:[#allocation7 + $0x70] sm:$0xff] %v277_v39 }
 0x116   :  { %299 = vsyncadd [#allocation4], 1792  ;;  %s510_s2 = smov [#allocation7]  }
 0x117   :  { %s300_s25 = sshll.u32 %s510_s2, 4  ;;  %s301_s25 = int_to_ptr.vmem [resolvable:$true] %s300_s25 }
 0x118   :  { %s480_s26 = scalar_lea.vmem %s301_s25, 256  ;;  %s484_s27 = scalar_lea.vmem %s301_s25, 2048 }
 0x119   :  { %p481_p10 = scmp.ne.s32.totalorder %s301_s25, %s480_s26  ;;  %p485_p11 = scmp.lt.s32.totalorder %s301_s25, %s301_s25 }
 0x11a   :  { %p486_p12 = scmp.lt.s32.totalorder %s484_s27, %s480_s26 }
 0x11c   :  { %p487_p13 = por %p486_p12, %p485_p11 }
 0x11e   :  { %p488_p0 = pnand %p487_p13, %p481_p10 }
 0x120   :  { %491 = shalt.err (!%p488_p0)
}
 0x121   :  { %306 = dma.vmem_to_hbm [thread:$0]  %s301_s25, 256, %s613_s3, [#allocation4], %s507_s16, %s507_s16, %s508_s17  }
 0x122   :  { %504 = dma.done.wait [#allocation4], 2048  }
 0x123   :  { %505 = vsyncadd [#allocation4], 4294965248 }
 0x124   :  { %310 = vsyncpa [#allocation3], 1 }
 0x125   :  { %311 = vsyncpa [#allocation6], 1 }
 0x126   :  { %312 = vsyncpa [#allocation4], 1 }

</bundles_post_ra>
